<compile_context>
chip_gen: v7x
topology: tpu7x:2x2x1
jax: 0.10.0
libtpu: 0.0.40
codegen_flags: <defaults>
</compile_context>

<pallas_src>
import jax
import jax.numpy as jnp
from jax.experimental import pallas as pl
from jax.experimental.pallas import tpu as pltpu

H = 5
W = 5
K = 3        # kernel size
S = 3        # stride (MaxPool2d default: stride = kernel_size)
OH = 2       # ceil((H - K) / S) + 1 with ceil_mode=True
OW = 2
LANE = 128   # TPU lane width
SUBLANE = 8  # TPU sublane count (f32)


def _window_rows():
    """Static pixel-row indices (flattened 25-pixel axis) per pooling window."""
    windows = []
    for oh in range(OH):
        for ow in range(OW):
            h0, w0 = oh * S, ow * S
            h1, w1 = min(h0 + K, H), min(w0 + K, W)   # ceil_mode clipping
            windows.append(tuple(h * W + w
                                 for h in range(h0, h1) for w in range(w0, w1)))
    return tuple(windows)


_WINDOW_ROWS = _window_rows()
# -> ((0,1,2,5,6,7,10,11,12), (3,4,8,9,13,14), (15,16,17,20,21,22), (18,19,23,24))
# All four clipped windows are non-empty, so there is no -inf/NaN hazard.


def _round_up(v, m):
    return ((v + m - 1) // m) * m


def _maxpool_kernel(x_ref, o_ref):
    # x_ref: (25, TILE_B) in VMEM -- pixels on sublanes, batch on lanes (lane-dense).
    # o_ref: (4, TILE_B)  in VMEM -- one pooling window per sublane row.
    # Each output row is a tree-shaped elementwise max over a static set of input
    # rows: pure VPU work, no iota/select, no cross-lane reductions, lane-dense
    # (full-128-lane) stores.
    for k, rows in enumerate(_WINDOW_ROWS):
        vals = [x_ref[r:r + 1, :] for r in rows]
        while len(vals) > 1:                                  # tree reduction
            nxt = [jnp.maximum(vals[i], vals[i + 1])
                   for i in range(0, len(vals) - 1, 2)]
            if len(vals) % 2:
                nxt.append(vals[-1])
            vals = nxt
        o_ref[k:k + 1, :] = vals[0]


def maxpool_lanes(xt, *, tile_b=32768):
    """Contracted lane-dense entry point: (25, B) -> (4, B), no layout plumbing."""
    p, b = xt.shape
    assert p == H * W, "expected flattened 5x5 pixels on the sublane axis"
    dtype = xt.dtype
    itemsize = jnp.dtype(dtype).itemsize

    # Lane tile: multiple of 128, capped by the (rounded-up) batch.
    tile = max(LANE, min(int(tile_b), _round_up(b, LANE)))
    tile = (tile // LANE) * LANE
    grid = (pl.cdiv(b, tile),)        # ragged last block handled by masked writes

    # Explicit VMEM budget from the padded layout: the (25, tile) input block
    # occupies 32 sublanes in VMEM, the (4, tile) output occupies 8, and the
    # pipeline double-buffers each.  1.5x headroom + 8 MiB for compiler scratch.
    in_block = _round_up(H * W, SUBLANE) * tile * itemsize
    out_block = _round_up(OH * OW, SUBLANE) * tile * itemsize
    vmem_limit = min(int(1.5 * 2 * (in_block + out_block)) + (8 << 20), 56 << 20)

    return pl.pallas_call(
        _maxpool_kernel,
        out_shape=jax.ShapeDtypeStruct((OH * OW, b), dtype),
        grid=grid,
        in_specs=[pl.BlockSpec((H * W, tile), lambda i: (0, i))],
        out_specs=pl.BlockSpec((OH * OW, tile), lambda i: (0, i)),
        compiler_params=pltpu.CompilerParams(
            dimension_semantics=("parallel",),
            vmem_limit_bytes=vmem_limit),
        cost_estimate=pl.CostEstimate(
            flops=21 * b,                                     # 8+5+5+3 maxes/sample
            transcendentals=0,
            bytes_accessed=(H * W + OH * OW) * b * itemsize),
    )(xt)


def dawn_forward(x, *, tile_b=32768):
    """MaxPool2d(3, stride=3, ceil_mode=True) on NCHW input (N, 1, 5, 5)."""
    n, c, h, w = x.shape
    assert (c, h, w) == (1, H, W), "Dawn expects input reshaped to (-1, 1, 5, 5)"
    b = n * c

    # Layout plumbing: batch onto the lane axis (25, B).  If the surrounding
    # graph can produce (25, B) directly, call `maxpool_lanes` and skip this.
    xt = x.reshape(b, H * W).T
    out_t = maxpool_lanes(xt, tile_b=tile_b)      # (4, B)
    return out_t.T.reshape(n, c, OH, OW)          # back to NCHW


def _reference_maxpool(x):
    """Pure-JAX reference (same semantics as torch MaxPool2d(3, ceil_mode=True))."""
    n, c, _, _ = x.shape
    cols = []
    for oh in range(OH):
        for ow in range(OW):
            h0, w0 = oh * S, ow * S
            h1, w1 = min(h0 + K, H), min(w0 + K, W)
            cols.append(jnp.max(x[:, :, h0:h1, w0:w1], axis=(2, 3)))
    return jnp.stack(cols, axis=-1).reshape(n, c, OH, OW)


if __name__ == "__main__":
    key = jax.random.PRNGKey(0)
    # Equivalent of: input = torch.reshape(input, (-1, 1, 5, 5))
    x = jax.random.normal(key, (8 * 1 * 5 * 5,), dtype=jnp.float32)
    x = x.reshape(-1, 1, 5, 5)  # -> (8, 1, 5, 5)

    out = dawn_forward(x)
    jax.block_until_ready(out)

    ref = _reference_maxpool(x)
    assert out.shape == (8, 1, OH, OW), out.shape
    assert out.dtype == x.dtype, out.dtype
    assert jnp.allclose(out, ref, atol=0.0), "mismatch vs reference"

    print("KERNEL_OK")
</pallas_src>

<mosaic_0001>
module attributes {stable_mosaic.version = 11 : i64} {
  func.func @_maxpool_kernel(%arg0: i32, %arg1: memref<25x128xf32, #tpu.memory_space<vmem>>, %arg2: memref<4x128xf32, #tpu.memory_space<vmem>>) attributes {dimension_semantics = [#tpu.dimension_semantics<parallel>], iteration_bounds = array<i64: 1>, scalar_prefetch = 0 : i64, scratch_operands = 0 : i64, tpu.core_type = #tpu.core_type<tc>, window_params = [{transform_indices = @transform_0, window_bounds = array<i64: 25, 128>}, {transform_indices = @transform_1, window_bounds = array<i64: 4, 128>}]} {
    %c0 = arith.constant 0 : index
    %c0_0 = arith.constant 0 : index
    %0 = vector.load %arg1[%c0, %c0_0] : memref<25x128xf32, #tpu.memory_space<vmem>>, vector<1x128xf32>
    %c1 = arith.constant 1 : index
    %c0_1 = arith.constant 0 : index
    %1 = vector.load %arg1[%c1, %c0_1] : memref<25x128xf32, #tpu.memory_space<vmem>>, vector<1x128xf32>
    %c2 = arith.constant 2 : index
    %c0_2 = arith.constant 0 : index
    %2 = vector.load %arg1[%c2, %c0_2] : memref<25x128xf32, #tpu.memory_space<vmem>>, vector<1x128xf32>
    %c5 = arith.constant 5 : index
    %c0_3 = arith.constant 0 : index
    %3 = vector.load %arg1[%c5, %c0_3] : memref<25x128xf32, #tpu.memory_space<vmem>>, vector<1x128xf32>
    %c6 = arith.constant 6 : index
    %c0_4 = arith.constant 0 : index
    %4 = vector.load %arg1[%c6, %c0_4] : memref<25x128xf32, #tpu.memory_space<vmem>>, vector<1x128xf32>
    %c7 = arith.constant 7 : index
    %c0_5 = arith.constant 0 : index
    %5 = vector.load %arg1[%c7, %c0_5] : memref<25x128xf32, #tpu.memory_space<vmem>>, vector<1x128xf32>
    %c10 = arith.constant 10 : index
    %c0_6 = arith.constant 0 : index
    %6 = vector.load %arg1[%c10, %c0_6] : memref<25x128xf32, #tpu.memory_space<vmem>>, vector<1x128xf32>
    %c11 = arith.constant 11 : index
    %c0_7 = arith.constant 0 : index
    %7 = vector.load %arg1[%c11, %c0_7] : memref<25x128xf32, #tpu.memory_space<vmem>>, vector<1x128xf32>
    %c12 = arith.constant 12 : index
    %c0_8 = arith.constant 0 : index
    %8 = vector.load %arg1[%c12, %c0_8] : memref<25x128xf32, #tpu.memory_space<vmem>>, vector<1x128xf32>
    %9 = arith.maximumf %0, %1 : vector<1x128xf32>
    %10 = arith.maximumf %2, %3 : vector<1x128xf32>
    %11 = arith.maximumf %4, %5 : vector<1x128xf32>
    %12 = arith.maximumf %6, %7 : vector<1x128xf32>
    %13 = arith.maximumf %9, %10 : vector<1x128xf32>
    %14 = arith.maximumf %11, %12 : vector<1x128xf32>
    %15 = arith.maximumf %13, %14 : vector<1x128xf32>
    %16 = arith.maximumf %15, %8 : vector<1x128xf32>
    %c0_9 = arith.constant 0 : index
    %c0_10 = arith.constant 0 : index
    %17 = vector.load %arg2[%c0_9, %c0_10] : memref<4x128xf32, #tpu.memory_space<vmem>>, vector<1x128xf32>
    tpu.vector_store %arg2[%c0_9, %c0_10], %16 {strides = array<i32>} : memref<4x128xf32, #tpu.memory_space<vmem>>, vector<1x128xf32>,
    %c3 = arith.constant 3 : index
    %c0_11 = arith.constant 0 : index
    %18 = vector.load %arg1[%c3, %c0_11] : memref<25x128xf32, #tpu.memory_space<vmem>>, vector<1x128xf32>
    %c4 = arith.constant 4 : index
    %c0_12 = arith.constant 0 : index
    %19 = vector.load %arg1[%c4, %c0_12] : memref<25x128xf32, #tpu.memory_space<vmem>>, vector<1x128xf32>
    %c8 = arith.constant 8 : index
    %c0_13 = arith.constant 0 : index
    %20 = vector.load %arg1[%c8, %c0_13] : memref<25x128xf32, #tpu.memory_space<vmem>>, vector<1x128xf32>
    %c9 = arith.constant 9 : index
    %c0_14 = arith.constant 0 : index
    %21 = vector.load %arg1[%c9, %c0_14] : memref<25x128xf32, #tpu.memory_space<vmem>>, vector<1x128xf32>
    %c13 = arith.constant 13 : index
    %c0_15 = arith.constant 0 : index
    %22 = vector.load %arg1[%c13, %c0_15] : memref<25x128xf32, #tpu.memory_space<vmem>>, vector<1x128xf32>
    %c14 = arith.constant 14 : index
    %c0_16 = arith.constant 0 : index
    %23 = vector.load %arg1[%c14, %c0_16] : memref<25x128xf32, #tpu.memory_space<vmem>>, vector<1x128xf32>
    %24 = arith.maximumf %18, %19 : vector<1x128xf32>
    %25 = arith.maximumf %20, %21 : vector<1x128xf32>
    %26 = arith.maximumf %22, %23 : vector<1x128xf32>
    %27 = arith.maximumf %24, %25 : vector<1x128xf32>
    %28 = arith.maximumf %27, %26 : vector<1x128xf32>
    %c1_17 = arith.constant 1 : index
    %c0_18 = arith.constant 0 : index
    %29 = vector.load %arg2[%c1_17, %c0_18] : memref<4x128xf32, #tpu.memory_space<vmem>>, vector<1x128xf32>
    tpu.vector_store %arg2[%c1_17, %c0_18], %28 {strides = array<i32>} : memref<4x128xf32, #tpu.memory_space<vmem>>, vector<1x128xf32>,
    %c15 = arith.constant 15 : index
    %c0_19 = arith.constant 0 : index
    %30 = vector.load %arg1[%c15, %c0_19] : memref<25x128xf32, #tpu.memory_space<vmem>>, vector<1x128xf32>
    %c16 = arith.constant 16 : index
    %c0_20 = arith.constant 0 : index
    %31 = vector.load %arg1[%c16, %c0_20] : memref<25x128xf32, #tpu.memory_space<vmem>>, vector<1x128xf32>
    %c17 = arith.constant 17 : index
    %c0_21 = arith.constant 0 : index
    %32 = vector.load %arg1[%c17, %c0_21] : memref<25x128xf32, #tpu.memory_space<vmem>>, vector<1x128xf32>
    %c20 = arith.constant 20 : index
    %c0_22 = arith.constant 0 : index
    %33 = vector.load %arg1[%c20, %c0_22] : memref<25x128xf32, #tpu.memory_space<vmem>>, vector<1x128xf32>
    %c21 = arith.constant 21 : index
    %c0_23 = arith.constant 0 : index
    %34 = vector.load %arg1[%c21, %c0_23] : memref<25x128xf32, #tpu.memory_space<vmem>>, vector<1x128xf32>
    %c22 = arith.constant 22 : index
    %c0_24 = arith.constant 0 : index
    %35 = vector.load %arg1[%c22, %c0_24] : memref<25x128xf32, #tpu.memory_space<vmem>>, vector<1x128xf32>
    %36 = arith.maximumf %30, %31 : vector<1x128xf32>
    %37 = arith.maximumf %32, %33 : vector<1x128xf32>
    %38 = arith.maximumf %34, %35 : vector<1x128xf32>
    %39 = arith.maximumf %36, %37 : vector<1x128xf32>
    %40 = arith.maximumf %39, %38 : vector<1x128xf32>
    %c2_25 = arith.constant 2 : index
    %c0_26 = arith.constant 0 : index
    %41 = vector.load %arg2[%c2_25, %c0_26] : memref<4x128xf32, #tpu.memory_space<vmem>>, vector<1x128xf32>
    tpu.vector_store %arg2[%c2_25, %c0_26], %40 {strides = array<i32>} : memref<4x128xf32, #tpu.memory_space<vmem>>, vector<1x128xf32>,
    %c18 = arith.constant 18 : index
    %c0_27 = arith.constant 0 : index
    %42 = vector.load %arg1[%c18, %c0_27] : memref<25x128xf32, #tpu.memory_space<vmem>>, vector<1x128xf32>
    %c19 = arith.constant 19 : index
    %c0_28 = arith.constant 0 : index
    %43 = vector.load %arg1[%c19, %c0_28] : memref<25x128xf32, #tpu.memory_space<vmem>>, vector<1x128xf32>
    %c23 = arith.constant 23 : index
    %c0_29 = arith.constant 0 : index
    %44 = vector.load %arg1[%c23, %c0_29] : memref<25x128xf32, #tpu.memory_space<vmem>>, vector<1x128xf32>
    %c24 = arith.constant 24 : index
    %c0_30 = arith.constant 0 : index
    %45 = vector.load %arg1[%c24, %c0_30] : memref<25x128xf32, #tpu.memory_space<vmem>>, vector<1x128xf32>
    %46 = arith.maximumf %42, %43 : vector<1x128xf32>
    %47 = arith.maximumf %44, %45 : vector<1x128xf32>
    %48 = arith.maximumf %46, %47 : vector<1x128xf32>
    %c3_31 = arith.constant 3 : index
    %c0_32 = arith.constant 0 : index
    %49 = vector.load %arg2[%c3_31, %c0_32] : memref<4x128xf32, #tpu.memory_space<vmem>>, vector<1x128xf32>
    tpu.vector_store %arg2[%c3_31, %c0_32], %48 {strides = array<i32>} : memref<4x128xf32, #tpu.memory_space<vmem>>, vector<1x128xf32>,
    return
  }
  func.func @transform_0(%arg0: i32) -> (i32, i32) {
    %c0_i32 = arith.constant 0 : i32
    %c0_i32_0 = arith.constant 0 : i32
    return %c0_i32, %arg0 : i32, i32
  }
  func.func @transform_1(%arg0: i32) -> (i32, i32) {
    %c0_i32 = arith.constant 0 : i32
    %c0_i32_0 = arith.constant 0 : i32
    return %c0_i32, %arg0 : i32, i32
  }
}

</mosaic_0001>

<bundles_post_ra>
// kernel: tpu_custom_call.1
= control target key start
LH: loop header
LB: loop body
LE: loop exit
PB: predicated region body
PF: predicated region fallthrough
CT: control target
= control target key end

     0   :  { %s196_s0 = inlined_call_operand.vmem [shape: f32[25,8], index: 0, kind: input, shape index: {}]   ;;  %s197_s1 = inlined_call_operand.hbm [shape: f32[4,8], index: 1, kind: output, shape index: {}]  }
   0x1   :  { %v9_v0 = vld [vmem:[%s196_s0] sm:$0x1]  ;;  %v10_v1 = vld [vmem:[%s196_s0 + $0x1] sm:$0x1]  ;;  %v11_v2 = vld [vmem:[%s196_s0 + $0x2] sm:$0x1] }
   0x2   :  { %v12_v3 = vld [vmem:[%s196_s0 + $0x5] sm:$0x1]  ;;  %v13_v4 = vld [vmem:[%s196_s0 + $0x6] sm:$0x1]  ;;  %v14_v5 = vld [vmem:[%s196_s0 + $0x7] sm:$0x1]  ;;  %v18_v6 = vmax.f32 %v9_v0, %v10_v1 }
   0x3   :  { %v15_v7 = vld [vmem:[%s196_s0 + $0xa] sm:$0x1]  ;;  %v16_v8 = vld [vmem:[%s196_s0 + $0xb] sm:$0x1]  ;;  %v19_v9 = vmax.f32 %v11_v2, %v12_v3  ;;  %v20_v10 = vmax.f32 %v13_v4, %v14_v5  ;;  %v27_v12 = vld [vmem:[%s196_s0 + $0x3] sm:$0x1] }
   0x4   :  { %v21_v11 = vmax.f32 %v15_v7, %v16_v8  ;;  %v28_v13 = vld [vmem:[%s196_s0 + $0x4] sm:$0x1]  ;;  %v29_v14 = vld [vmem:[%s196_s0 + $0x8] sm:$0x1]  ;;  %v17_v15 = vld [vmem:[%s196_s0 + $0xc] sm:$0x1] }
   0x5   :  { %v22_v16 = vmax.f32 %v18_v6, %v19_v9  ;;  %v30_v17 = vld [vmem:[%s196_s0 + $0x9] sm:$0x1]  ;;  %v31_v18 = vld [vmem:[%s196_s0 + $0xd] sm:$0x1]  ;;  %v32_v19 = vld [vmem:[%s196_s0 + $0xe] sm:$0x1]  ;;  %v33_v20 = vmax.f32 %v27_v12, %v28_v13 }
   0x6   :  { %v23_v21 = vmax.f32 %v20_v10, %v21_v11  ;;  %v34_v22 = vmax.f32 %v29_v14, %v30_v17  ;;  %v35_v23 = vmax.f32 %v31_v18, %v32_v19  ;;  %v39_v24 = vld [vmem:[%s196_s0 + $0xf] sm:$0x1]  ;;  %v40_v25 = vld [vmem:[%s196_s0 + $0x10] sm:$0x1]  ;;  %v41_v26 = vld [vmem:[%s196_s0 + $0x11] sm:$0x1] }
   0x7   :  { %v42_v27 = vld [vmem:[%s196_s0 + $0x14] sm:$0x1]  ;;  %v43_v28 = vld [vmem:[%s196_s0 + $0x15] sm:$0x1]  ;;  %v44_v29 = vld [vmem:[%s196_s0 + $0x16] sm:$0x1]  ;;  %v45_v30 = vmax.f32 %v39_v24, %v40_v25 }
   0x8   :  { %v24_v31 = vmax.f32 %v22_v16, %v23_v21  ;;  %v36_v32 = vmax.f32 %v33_v20, %v34_v22  ;;  %v46_v33 = vmax.f32 %v41_v26, %v42_v27  ;;  %v47_v34 = vmax.f32 %v43_v28, %v44_v29  ;;  %v51_v35 = vld [vmem:[%s196_s0 + $0x12] sm:$0x1]  ;;  %v52_v36 = vld [vmem:[%s196_s0 + $0x13] sm:$0x1]  ;;  %v53_v37 = vld [vmem:[%s196_s0 + $0x17] sm:$0x1] }
   0x9   :  { %v54_v38 = vld [vmem:[%s196_s0 + $0x18] sm:$0x1]  ;;  %v55_v39 = vmax.f32 %v51_v35, %v52_v36 }
   0xa   :  { %6 = vsyncpa [#allocation3], 0  ;;  %v25_v40 = vmax.f32 %v24_v31, %v17_v15  ;;  %v37_v41 = vmax.f32 %v36_v32, %v35_v23  ;;  %v48_v42 = vmax.f32 %v45_v30, %v46_v33  ;;  %v56_v43 = vmax.f32 %v53_v37, %v54_v38  ;;  %s98_s27 = smov [#allocation2]  }
   0xb   :  { %s65_s28 = sshll.u32 %s98_s27, 4  ;;  %s66_s28 = int_to_ptr.vmem [resolvable:$true] %s65_s28 }
   0xc   :  { %26 = vst [vmem:[#allocation2] sm:$0x1] %v25_v40  ;;  %38 = vst [vmem:[#allocation2 + $0x1] sm:$0x1] %v37_v41  ;;  %v49_v44 = vmax.f32 %v48_v42, %v47_v34  ;;  %v57_v45 = vmax.f32 %v55_v39, %v56_v43  ;;  %s74_s29 = scalar_lea.vmem %s66_s28, 64  ;;  %p79_p1 = scmp.lt.s32.totalorder %s66_s28, %s66_s28 }
   0xd   :  { %p75_p0 = scmp.ne.s32.totalorder %s66_s28, %s74_s29  ;;  %p80_p2 = scmp.lt.s32.totalorder %s74_s29, %s74_s29 }
   0xe   :  { %50 = vst [vmem:[#allocation2 + $0x2] sm:$0x1] %v49_v44  ;;  %58 = vst [vmem:[#allocation2 + $0x3] sm:$0x1] %v57_v45 }
   0xf   :  { %p81_p3 = por %p80_p2, %p79_p1 }
  0x11   :  { %p82_p4 = pnand %p81_p3, %p75_p0 }
  0x13   :  { %85 = shalt.err (!%p82_p4)
}
  0x14   :  { %s86_s2 = scalar_lea.hbm %s197_s1, 64 }
  0x15   :  { %p87_p5 = scmp.ne.s32.totalorder %s197_s1, %s86_s2  ;;  %p90_p6 = scmp.lt.u32.totalorder %s86_s2, %s197_s1 }
  0x17   :  { %p92_p7 = pnand %p90_p6, %p87_p5 }
  0x19   :  { %95 = shalt.err (!%p92_p7)
}
  0x1a   :  { %68 = dma.vmem_to_hbm [thread:$0]  %s66_s28, 64, %s197_s1, [#allocation3]  }
  0x1b   :  { %96 = dma.done.wait [#allocation3], 64  }
  0x1c   :  { %97 = vsyncadd [#allocation3], 4294967232 }
  0x1d   :  { %72 = vsyncpa [#allocation3], 1 }

</bundles_post_ra>
